<compile_context>
chip_gen: v7x
topology: tpu7x:2x2x1
jax: 0.10.0
libtpu: 0.0.40
codegen_flags: <defaults>
</compile_context>

<pallas_src>
import math
from functools import partial

import jax
import jax.numpy as jnp
from jax.experimental import pallas as pl
from jax.experimental.pallas import tpu as pltpu

EPS = 1e-5
_TR = 512   # row tile for elementwise / pooling kernels


def _round_up(x, m):
    return ((x + m - 1) // m) * m


def _row_tiling(R):
    Rp = _round_up(R, 16)
    if Rp > _TR:
        return _round_up(R, _TR), _TR
    return Rp, Rp


# --------------------------------------------------------------------------
# Pallas kernels
# --------------------------------------------------------------------------
def _matmul_stats_kernel(a_ref, b_ref, o_ref, st_ref, acc_ref):
    k = pl.program_id(2)

    @pl.when(k == 0)
    def _():
        acc_ref[...] = jnp.zeros_like(acc_ref)

    acc_ref[...] += jnp.dot(a_ref[...], b_ref[...],
                            preferred_element_type=jnp.float32)

    @pl.when(k == pl.num_programs(2) - 1)
    def _():
        acc = acc_ref[...]
        o_ref[...] = acc.astype(o_ref.dtype)
        s = jnp.sum(acc, axis=0, keepdims=True)          # (1, tn)
        sq = jnp.sum(acc * acc, axis=0, keepdims=True)   # (1, tn)
        row = jax.lax.broadcasted_iota(jnp.int32, st_ref.shape, 0)
        st_ref[...] = jnp.where(row == 0, s, jnp.where(row == 1, sq, 0.0))


def pallas_matmul_stats(a, b, out_dtype=jnp.bfloat16):
    """(M,K)@(K,N) in bf16 on the MXU with f32 accumulation.  Also emits the
    per-column sum and sum-of-squares of the f32 accumulator (for BatchNorm)."""
    M, K = a.shape
    K2, N = b.shape
    assert K == K2
    tm = 256 if M >= 512 else (128 if M >= 128 else _round_up(M, 16))
    tn = 256 if N >= 512 else 128
    tk = 256 if K >= 256 else _round_up(K, 128)
    Mp, Np, Kp = _round_up(M, tm), _round_up(N, tn), _round_up(K, tk)
    a_p = jnp.pad(a.astype(jnp.bfloat16), ((0, Mp - M), (0, Kp - K)))
    b_p = jnp.pad(b.astype(jnp.bfloat16), ((0, Kp - K), (0, Np - N)))
    mt = Mp // tm
    out, stats = pl.pallas_call(
        _matmul_stats_kernel,
        out_shape=(jax.ShapeDtypeStruct((Mp, Np), out_dtype),
                   jax.ShapeDtypeStruct((mt, 8, Np), jnp.float32)),
        grid=(mt, Np // tn, Kp // tk),
        in_specs=[pl.BlockSpec((tm, tk), lambda i, j, k: (i, k)),
                  pl.BlockSpec((tk, tn), lambda i, j, k: (k, j))],
        out_specs=(pl.BlockSpec((tm, tn), lambda i, j, k: (i, j)),
                   pl.BlockSpec((None, 8, tn), lambda i, j, k: (i, 0, j))),
        scratch_shapes=[pltpu.VMEM((tm, tn), jnp.float32)],
        compiler_params=pltpu.CompilerParams(
            dimension_semantics=("parallel", "parallel", "arbitrary")),
    )(a_p, b_p)
    # Padded rows/cols are zero, so they contribute nothing to the sums.
    col_sum = jnp.sum(stats[:, 0, :N], axis=0)
    col_sq = jnp.sum(stats[:, 1, :N], axis=0)
    return out[:M, :N], col_sum, col_sq


def _small_matmul_kernel(a_ref, b_ref, o_ref):
    o_ref[...] = jnp.dot(a_ref[...], b_ref[...],
                         preferred_element_type=jnp.float32)


def small_matmul(a, b):
    """Single right-sized tile for the tiny graph-head / per-block matmuls
    (avoids the 128/256-tile padding + pipeline warm-up waste)."""
    M, K = a.shape
    K2, N = b.shape
    assert K == K2
    if a.dtype != b.dtype:
        a = a.astype(jnp.float32)
        b = b.astype(jnp.float32)
    align_m = 16 if a.dtype == jnp.bfloat16 else 8
    Mp, Kp, Np = _round_up(M, align_m), _round_up(K, 128), _round_up(N, 128)
    a_p = jnp.pad(a, ((0, Mp - M), (0, Kp - K)))
    b_p = jnp.pad(b, ((0, Kp - K), (0, Np - N)))
    out = pl.pallas_call(
        _small_matmul_kernel,
        out_shape=jax.ShapeDtypeStruct((Mp, Np), jnp.float32),
        grid=(1,),
        in_specs=[pl.BlockSpec((Mp, Kp), lambda i: (0, 0)),
                  pl.BlockSpec((Kp, Np), lambda i: (0, 0))],
        out_specs=pl.BlockSpec((Mp, Np), lambda i: (0, 0)),
    )(a_p, b_p)
    return out[:M, :N]


def _affine_kernel(x_ref, s_ref, b_ref, o_ref, *, relu):
    y = x_ref[...].astype(jnp.float32) * s_ref[...] + b_ref[...]
    if relu:
        y = jnp.maximum(y, 0.0)
    o_ref[...] = y.astype(o_ref.dtype)


def _affine_res_kernel(x_ref, s_ref, b_ref, r_ref, o_ref):
    y = (x_ref[...].astype(jnp.float32) * s_ref[...] + b_ref[...]
         + r_ref[...].astype(jnp.float32))
    o_ref[...] = jnp.maximum(y, 0.0).astype(o_ref.dtype)


def _affine_call(x2, scale, shift, residual=None, relu=False, out_dtype=None):
    """Fused y = x*scale + shift (+ residual) (+ relu) on a (rows, C) array."""
    R, C = x2.shape
    if out_dtype is None:
        out_dtype = x2.dtype
    Rp, tr = _row_tiling(R)
    xp = jnp.pad(x2, ((0, Rp - R), (0, 0)))
    sp = scale.astype(jnp.float32).reshape(1, C)
    bp = shift.astype(jnp.float32).reshape(1, C)
    xspec = pl.BlockSpec((tr, C), lambda i: (i, 0))
    vspec = pl.BlockSpec((1, C), lambda i: (0, 0))
    cp = pltpu.CompilerParams(dimension_semantics=("parallel",))
    if residual is None:
        out = pl.pallas_call(
            partial(_affine_kernel, relu=relu),
            out_shape=jax.ShapeDtypeStruct((Rp, C), out_dtype),
            grid=(Rp // tr,),
            in_specs=[xspec, vspec, vspec],
            out_specs=xspec,
            compiler_params=cp,
        )(xp, sp, bp)
    else:
        rp_a = jnp.pad(residual, ((0, Rp - R), (0, 0)))
        out = pl.pallas_call(
            _affine_res_kernel,
            out_shape=jax.ShapeDtypeStruct((Rp, C), out_dtype),
            grid=(Rp // tr,),
            in_specs=[xspec, vspec, vspec, xspec],
            out_specs=xspec,
            compiler_params=cp,
        )(xp, sp, bp, rp_a)
    return out[:R]


def _pool_kernel(x_ref, o_ref, acc_ref, *, mode, nk):
    k = pl.program_id(1)

    @pl.when(k == 0)
    def _():
        init = -jnp.inf if mode == "max" else 0.0
        acc_ref[...] = jnp.full(acc_ref.shape, init, jnp.float32)

    x = x_ref[...].astype(jnp.float32)
    if mode == "max":
        acc_ref[...] = jnp.maximum(acc_ref[...], x)
    else:
        acc_ref[...] = acc_ref[...] + x

    @pl.when(k == pl.num_programs(1) - 1)
    def _():
        r = acc_ref[...]
        if mode == "mean":
            r = r * (1.0 / nk)
        o_ref[...] = r.astype(o_ref.dtype)


def pool_reduce(patches, mode, out_dtype=None):
    """Reduce (K, R, C) over the leading tap axis (max or mean): taps are an
    'arbitrary' grid axis accumulating into a (tr, C) VMEM scratch."""
    K, R, C = patches.shape
    if out_dtype is None:
        out_dtype = patches.dtype if mode == "max" else jnp.float32
    Rp, tr = _row_tiling(R)
    xp = jnp.pad(patches, ((0, 0), (0, Rp - R), (0, 0)))
    out = pl.pallas_call(
        partial(_pool_kernel, mode=mode, nk=K),
        out_shape=jax.ShapeDtypeStruct((Rp, C), out_dtype),
        grid=(Rp // tr, K),
        in_specs=[pl.BlockSpec((None, tr, C), lambda i, k: (k, i, 0))],
        out_specs=pl.BlockSpec((tr, C), lambda i, k: (i, 0)),
        scratch_shapes=[pltpu.VMEM((tr, C), jnp.float32)],
        compiler_params=pltpu.CompilerParams(
            dimension_semantics=("parallel", "arbitrary")),
    )(xp)
    return out[:R]


# --------------------------------------------------------------------------
# Conv + BatchNorm (training-mode stats) + ReLU building blocks
# --------------------------------------------------------------------------
def _matmul_for_bn(patches, wmat):
    M, K = patches.shape
    N = wmat.shape[1]
    if M <= 256 and N <= 256 and K <= 2048:
        out = small_matmul(patches, wmat)            # f32, tiny
        s = jnp.sum(out, axis=0)
        sq = jnp.sum(out * out, axis=0)
        return out, s, sq
    return pallas_matmul_stats(patches, wmat, out_dtype=jnp.bfloat16)


def _bn_affine(out2, col_sum, col_sq, rows, gamma, beta, *, relu, residual=None):
    rows_f = float(rows)
    mean = col_sum / rows_f
    var = jnp.maximum(col_sq / rows_f - mean * mean, 0.0)   # biased, PyTorch fwd
    scale = gamma * jax.lax.rsqrt(var + EPS)
    shift = beta - mean * scale
    return _affine_call(out2, scale, shift, residual=residual, relu=relu,
                        out_dtype=jnp.bfloat16)


def conv_bn_2d(x, w, gamma, beta, *, stride=1, padding=0, relu=False,
               residual=None, dilation=1):
    # TODO(synk): strided / tap-offset im2col windows are not expressible as a
    # rectangular BlockSpec index_map, so patch extraction stays in JAX glue
    # (built directly in bf16 to halve the HBM traffic of the materialization).
    Cout, Cin, kh, kw = w.shape
    xb = x.astype(jnp.bfloat16)
    N, H, W, _ = xb.shape
    Ho = (H + 2 * padding - dilation * (kh - 1) - 1) // stride + 1
    Wo = (W + 2 * padding - dilation * (kw - 1) - 1) // stride + 1
    xp = jnp.pad(xb, ((0, 0), (padding, padding), (padding, padding), (0, 0)))
    cols = []
    for dy in range(kh):
        for dx in range(kw):
            y0, x0 = dy * dilation, dx * dilation
            cols.append(xp[:, y0:y0 + stride * (Ho - 1) + 1:stride,
                           x0:x0 + stride * (Wo - 1) + 1:stride, :])
    patches = jnp.stack(cols, axis=3).reshape(N * Ho * Wo, kh * kw * Cin)
    wmat = jnp.transpose(w, (2, 3, 1, 0)).reshape(kh * kw * Cin, Cout)
    out2, s, sq = _matmul_for_bn(patches, wmat.astype(jnp.bfloat16))
    res2 = None if residual is None else residual.reshape(N * Ho * Wo, Cout)
    y = _bn_affine(out2, s, sq, N * Ho * Wo, gamma, beta, relu=relu, residual=res2)
    return y.reshape(N, Ho, Wo, Cout)


def conv_bn_3d(x, w, gamma, beta, *, stride=(1, 1, 1), padding=(0, 0, 0),
               relu=False, residual=None):
    Cout, Cin, kt, kh, kw = w.shape
    xb = x.astype(jnp.bfloat16)
    N, T, H, W, _ = xb.shape
    st, sh, sw = stride
    pt, ph, pw = padding
    To = (T + 2 * pt - kt) // st + 1
    Ho = (H + 2 * ph - kh) // sh + 1
    Wo = (W + 2 * pw - kw) // sw + 1
    xp = jnp.pad(xb, ((0, 0), (pt, pt), (ph, ph), (pw, pw), (0, 0)))
    cols = []
    for dt in range(kt):
        for dy in range(kh):
            for dx in range(kw):
                cols.append(xp[:, dt:dt + st * (To - 1) + 1:st,
                               dy:dy + sh * (Ho - 1) + 1:sh,
                               dx:dx + sw * (Wo - 1) + 1:sw, :])
    patches = jnp.stack(cols, axis=4).reshape(N * To * Ho * Wo, kt * kh * kw * Cin)
    wmat = jnp.transpose(w, (2, 3, 4, 1, 0)).reshape(kt * kh * kw * Cin, Cout)
    out2, s, sq = _matmul_for_bn(patches, wmat.astype(jnp.bfloat16))
    res2 = None if residual is None else residual.reshape(N * To * Ho * Wo, Cout)
    y = _bn_affine(out2, s, sq, N * To * Ho * Wo, gamma, beta, relu=relu,
                   residual=res2)
    return y.reshape(N, To, Ho, Wo, Cout)


def maxpool2d(x, k=3, s=2, p=1):
    N, H, W, C = x.shape
    Ho = (H + 2 * p - k) // s + 1
    Wo = (W + 2 * p - k) // s + 1
    xp = jnp.pad(x, ((0, 0), (p, p), (p, p), (0, 0)), constant_values=-jnp.inf)
    cols = []
    for dy in range(k):
        for dx in range(k):
            cols.append(xp[:, dy:dy + s * (Ho - 1) + 1:s,
                           dx:dx + s * (Wo - 1) + 1:s, :].reshape(N * Ho * Wo, C))
    patches = jnp.stack(cols, axis=0)   # (K, R, C) lane-dense 2D slabs per tap
    return pool_reduce(patches, "max").reshape(N, Ho, Wo, C)


def maxpool3d(x, k=(1, 3, 3), s=(2, 2, 2), p=(0, 1, 1)):
    # Matches the module: MaxPool3d(kernel_size=(1,3,3), stride=(2,2,2), padding=(0,1,1))
    N, T, H, W, C = x.shape
    To = (T + 2 * p[0] - k[0]) // s[0] + 1
    Ho = (H + 2 * p[1] - k[1]) // s[1] + 1
    Wo = (W + 2 * p[2] - k[2]) // s[2] + 1
    xp = jnp.pad(x, ((0, 0), (p[0], p[0]), (p[1], p[1]), (p[2], p[2]), (0, 0)),
                 constant_values=-jnp.inf)
    cols = []
    for dt in range(k[0]):
        for dy in range(k[1]):
            for dx in range(k[2]):
                cols.append(xp[:, dt:dt + s[0] * (To - 1) + 1:s[0],
                               dy:dy + s[1] * (Ho - 1) + 1:s[1],
                               dx:dx + s[2] * (Wo - 1) + 1:s[2], :]
                            .reshape(N * To * Ho * Wo, C))
    patches = jnp.stack(cols, axis=0)
    return pool_reduce(patches, "max").reshape(N, To, Ho, Wo, C)


def global_avgpool(x):
    """AdaptiveAvgPool to (1,...,1) over all spatial dims; returns (N, C) f32."""
    shp = x.shape
    N, C = shp[0], shp[-1]
    K = int(math.prod(shp[1:-1]))
    patches = jnp.transpose(x.reshape(N, K, C), (1, 0, 2))   # (K, N, C)
    return pool_reduce(patches, "mean", out_dtype=jnp.float32)


# --------------------------------------------------------------------------
# Graph head (tiny matmuls -> single-tile Pallas path, f32)
# --------------------------------------------------------------------------
def linear(x, w, b=None):
    y = small_matmul(x.astype(jnp.float32), jnp.transpose(w))
    if b is not None:
        y = y + b[None, :]
    return y


def bn1d_relu(x2, gamma, beta):
    R = x2.shape[0]
    x32 = x2.astype(jnp.float32)
    s = jnp.sum(x32, axis=0)
    sq = jnp.sum(x32 * x32, axis=0)
    mean = s / R
    var = jnp.maximum(sq / R - mean * mean, 0.0)
    scale = gamma * jax.lax.rsqrt(var + EPS)
    shift = beta - mean * scale
    return _affine_call(x32, scale, shift, relu=True, out_dtype=jnp.float32)


def linear_path_preact(x, p):
    x1 = bn1d_relu(x, p["bn1_g"], p["bn1_b"])
    x1 = small_matmul(x1, jnp.transpose(p["fc1_w"]))
    x2 = bn1d_relu(x1, p["bn2_g"], p["bn2_b"])
    x2 = small_matmul(x2, jnp.transpose(p["fc2_w"]))
    return x2


def edge_conv(x, edge_index, p):
    # PyG EdgeConv, default 'max' aggregation: out_i = max_{(j->i)} nn([x_i, x_j - x_i])
    src, dst = edge_index[0], edge_index[1]
    x_i = x[dst]
    x_j = x[src]
    e = jnp.concatenate([x_i, x_j - x_i], axis=1)
    m = linear_path_preact(e, p)
    # TODO(synk): scatter-max over arbitrary edge indices has no rectangular
    # BlockSpec equivalent; aggregation stays as jax.ops.segment_max glue.
    out = jax.ops.segment_max(m, dst, num_segments=x.shape[0])
    return jnp.where(jnp.isfinite(out), out, 0.0)


# --------------------------------------------------------------------------
# ResNet blocks & full forward
# --------------------------------------------------------------------------
def basic_block_2d(x, p, stride=1):
    out = conv_bn_2d(x, p["conv1_w"], p["bn1_g"], p["bn1_b"],
                     stride=stride, padding=1, relu=True)
    if "ds_w" in p:
        identity = conv_bn_2d(x, p["ds_w"], p["ds_g"], p["ds_b"],
                              stride=stride, padding=0, relu=False)
    else:
        identity = x
    return conv_bn_2d(out, p["conv2_w"], p["bn2_g"], p["bn2_b"],
                      stride=1, padding=1, relu=True, residual=identity)


def basic_block_3d(x, p, stride=1):
    s = (stride, stride, stride)
    out = conv_bn_3d(x, p["conv1_w"], p["bn1_g"], p["bn1_b"],
                     stride=s, padding=(1, 1, 1), relu=True)
    if "ds_w" in p:
        identity = conv_bn_3d(x, p["ds_w"], p["ds_g"], p["ds_b"],
                              stride=s, padding=(0, 0, 0), relu=False)
    else:
        identity = x
    return conv_bn_3d(out, p["conv2_w"], p["bn2_g"], p["bn2_b"],
                      stride=(1, 1, 1), padding=(1, 1, 1), relu=True,
                      residual=identity)


def forward_audio(params, a):
    # a: (Na, 1, Ha, Wa) NCHW -> NHWC
    a = jnp.transpose(a, (0, 2, 3, 1))
    a = conv_bn_2d(a, params["audio_conv1_w"], params["a_bn1_g"],
                   params["a_bn1_b"], stride=2, padding=3, relu=True)
    a = maxpool2d(a, 3, 2, 1)
    for name, stride in [("a_layer1", 1), ("a_layer2", 2),
                         ("a_layer3", 2), ("a_layer4", 2)]:
        for bi, bp in enumerate(params[name]):
            a = basic_block_2d(a, bp, stride=stride if bi == 0 else 1)
    return global_avgpool(a)       # (Na, 512) f32


def forward_video(params, v):
    # v: (Nv, 3, T, H, W) NCDHW -> NDHWC
    v = jnp.transpose(v, (0, 2, 3, 4, 1))
    v = conv_bn_3d(v, params["v_conv1_w"], params["v_bn1_g"], params["v_bn1_b"],
                   stride=(1, 2, 2), padding=(3, 3, 3), relu=True)
    v = maxpool3d(v)
    for name, stride in [("v_layer1", 1), ("v_layer2", 2),
                         ("v_layer3", 2), ("v_layer4", 2)]:
        for bi, bp in enumerate(params[name]):
            v = basic_block_3d(v, bp, stride=stride if bi == 0 else 1)
    return global_avgpool(v)       # (Nv, 512) f32


def forward(params, x, edge_index, audio_idx, video_idx, audio_hw):
    N = x.shape[0]
    Ha, Wa = audio_hw
    a_in = x[audio_idx][:, 0, 0, :Ha, :Wa][:, None, :, :]   # (Na,1,Ha,Wa)
    v_in = x[video_idx]                                      # (Nv,3,T,H,W)

    audio_feats = forward_audio(params, a_in)
    video_feats = forward_video(params, v_in)

    audio_feats = jnp.maximum(
        linear(audio_feats, params["reduction_a_w"], params["reduction_a_b"]), 0.0)
    video_feats = jnp.maximum(
        linear(video_feats, params["reduction_v_w"], params["reduction_v_b"]), 0.0)

    graph_feats = jnp.zeros((N, 128), dtype=audio_feats.dtype)
    graph_feats = graph_feats.at[audio_idx].set(audio_feats)
    graph_feats = graph_feats.at[video_idx].set(video_feats)

    audio_out = linear(graph_feats[audio_idx],
                       params["fc_aux_a_w"], params["fc_aux_a_b"])
    video_out = linear(graph_feats[video_idx],
                       params["fc_aux_v_w"], params["fc_aux_v_b"])

    graph_feats = edge_conv(graph_feats, edge_index, params["edge1"])
    graph_feats = edge_conv(graph_feats, edge_index, params["edge2"])
    graph_feats = edge_conv(graph_feats, edge_index, params["edge3"])
    graph_feats = edge_conv(graph_feats, edge_index, params["edge4"])

    out = linear(graph_feats, params["fc_w"], params["fc_b"])
    return out, audio_out, video_out


# --------------------------------------------------------------------------
# Deterministic parameter initialization (mirrors the module's __init__)
# --------------------------------------------------------------------------
class KeyGen:
    def __init__(self, seed=0):
        self.key = jax.random.PRNGKey(seed)

    def __call__(self):
        self.key, sub = jax.random.split(self.key)
        return sub


def init_params(seed=0):
    kg = KeyGen(seed)

    def conv_w(shape):  # kaiming_normal_(mode='fan_out', nonlinearity='relu')
        fan_out = shape[0] * int(math.prod(shape[2:]))
        std = math.sqrt(2.0 / fan_out)
        return std * jax.random.normal(kg(), shape, jnp.float32)

    def lin_w(out_f, in_f):
        bound = 1.0 / math.sqrt(in_f)
        return jax.random.uniform(kg(), (out_f, in_f), jnp.float32, -bound, bound)

    def lin_b(out_f, in_f):
        bound = 1.0 / math.sqrt(in_f)
        return jax.random.uniform(kg(), (out_f,), jnp.float32, -bound, bound)

    def bn(c):
        return jnp.ones((c,), jnp.float32), jnp.zeros((c,), jnp.float32)

    params = {}
    # ---- audio 2D stem ----
    params["audio_conv1_w"] = conv_w((64, 1, 7, 7))
    params["a_bn1_g"], params["a_bn1_b"] = bn(64)

    def block2d(inpl, planes, stride):
        p = {"conv1_w": conv_w((planes, inpl, 3, 3)),
             "conv2_w": conv_w((planes, planes, 3, 3))}
        p["bn1_g"], p["bn1_b"] = bn(planes)
        p["bn2_g"], p["bn2_b"] = bn(planes)
        if stride != 1 or inpl != planes:
            p["ds_w"] = conv_w((planes, inpl, 1, 1))
            p["ds_g"], p["ds_b"] = bn(planes)
        return p

    inpl = 64
    for name, planes, stride in [("a_layer1", 64, 1), ("a_layer2", 128, 2),
                                 ("a_layer3", 256, 2), ("a_layer4", 512, 2)]:
        params[name] = [block2d(inpl, planes, stride)]   # layers_2d = [1,1,1,1]
        inpl = planes

    # ---- video 3D stem ----
    params["v_conv1_w"] = conv_w((64, 3, 7, 7, 7))
    params["v_bn1_g"], params["v_bn1_b"] = bn(64)

    def block3d(inpl, planes, stride):
        p = {"conv1_w": conv_w((planes, inpl, 3, 3, 3)),
             "conv2_w": conv_w((planes, planes, 3, 3, 3))}
        p["bn1_g"], p["bn1_b"] = bn(planes)
        p["bn2_g"], p["bn2_b"] = bn(planes)
        if stride != 1 or inpl != planes:
            p["ds_w"] = conv_w((planes, inpl, 1, 1, 1))
            p["ds_g"], p["ds_b"] = bn(planes)
        return p

    inpl = 64
    for name, planes, stride in [("v_layer1", 64, 1), ("v_layer2", 128, 2),
                                 ("v_layer3", 256, 2), ("v_layer4", 512, 2)]:
        params[name] = [block3d(inpl, planes, stride)]   # layers_3d = [1,1,1,1]
        inpl = planes

    # ---- heads ----
    params["reduction_a_w"], params["reduction_a_b"] = lin_w(128, 512), lin_b(128, 512)
    params["reduction_v_w"], params["reduction_v_b"] = lin_w(128, 512), lin_b(128, 512)
    params["fc_aux_a_w"], params["fc_aux_a_b"] = lin_w(2, 128), lin_b(2, 128)
    params["fc_aux_v_w"], params["fc_aux_v_b"] = lin_w(2, 128), lin_b(2, 128)
    params["fc_w"], params["fc_b"] = lin_w(2, 64), lin_b(2, 64)

    def lpp(in_c, hidden):
        p = {"fc1_w": lin_w(hidden, in_c), "fc2_w": lin_w(hidden, hidden)}
        p["bn1_g"], p["bn1_b"] = bn(in_c)
        p["bn2_g"], p["bn2_b"] = bn(hidden)
        return p

    params["edge1"] = lpp(128 * 2, 64)
    params["edge2"] = lpp(64 * 2, 64)
    params["edge3"] = lpp(64 * 2, 64)
    params["edge4"] = lpp(64 * 2, 64)
    return params


# --------------------------------------------------------------------------
def generate_av_mask(ctx_size, total_len):
    # Assumed convention: one audio node followed by ctx_size video nodes.
    stride = ctx_size + 1
    audio_idx = [i for i in range(total_len) if i % stride == 0]
    video_idx = [i for i in range(total_len) if i % stride != 0]
    return audio_idx, video_idx


if __name__ == "__main__":
    key = jax.random.PRNGKey(0)
    params = init_params(seed=0)

    # Small graph of 6 nodes, each node carries a (3, T, H, W) clip.
    N, C, T, H, W = 6, 3, 8, 16, 16
    ctx_size = 2
    audio_size = (1, 16, 16)   # (unused dim, Ha, Wa)

    kx, _ = jax.random.split(key)
    x = jax.random.normal(kx, (N, C, T, H, W), jnp.float32)

    audio_idx, video_idx = generate_av_mask(ctx_size, N)
    audio_idx = jnp.array(audio_idx, dtype=jnp.int32)
    video_idx = jnp.array(video_idx, dtype=jnp.int32)

    # Fully connected directed graph (incl. self loops): edge_index[0]=src, [1]=dst.
    src, dst = [], []
    for i in range(N):
        for j in range(N):
            src.append(j)
            dst.append(i)
    edge_index = jnp.array([src, dst], dtype=jnp.int32)

    out, audio_out, video_out = forward(params, x, edge_index, audio_idx, video_idx,
                                        (audio_size[1], audio_size[2]))
    jax.block_until_ready((out, audio_out, video_out))
    assert out.shape == (N, 2)
    assert audio_out.shape == (len(audio_idx), 2)
    assert video_out.shape == (len(video_idx), 2)
    print("KERNEL_OK")
</pallas_src>

<mosaic_0001>
module attributes {stable_mosaic.version = 11 : i64} {
  func.func @_small_matmul_kernel(%arg0: i32, %arg1: memref<128x128xbf16, #tpu.memory_space<vmem>>, %arg2: memref<128x128xbf16, #tpu.memory_space<vmem>>, %arg3: memref<128x128xf32, #tpu.memory_space<vmem>>) attributes {dimension_semantics = [#tpu.dimension_semantics<arbitrary>], iteration_bounds = array<i64: 1>, scalar_prefetch = 0 : i64, scratch_operands = 0 : i64, tpu.core_type = #tpu.core_type<tc>, window_params = [{pipeline_mode = #tpu.pipeline_mode<synchronous>, transform_indices = @transform_0, window_bounds = array<i64: 128, 128>}, {pipeline_mode = #tpu.pipeline_mode<synchronous>, transform_indices = @transform_1, window_bounds = array<i64: 128, 128>}, {pipeline_mode = #tpu.pipeline_mode<synchronous>, transform_indices = @transform_2, window_bounds = array<i64: 128, 128>}]} {
    %c0 = arith.constant 0 : index
    %c0_0 = arith.constant 0 : index
    %0 = vector.load %arg1[%c0, %c0_0] : memref<128x128xbf16, #tpu.memory_space<vmem>>, vector<128x128xbf16>
    %c0_1 = arith.constant 0 : index
    %c0_2 = arith.constant 0 : index
    %1 = vector.load %arg2[%c0_1, %c0_2] : memref<128x128xbf16, #tpu.memory_space<vmem>>, vector<128x128xbf16>
    %cst = arith.constant dense<0.000000e+00> : vector<128x128xf32>
    %2 = tpu.matmul %0, %1, %cst {dimension_numbers = #tpu.dot_dimension_numbers<[1], [0], [0], [1], [0, 0, 1, 1], [], []>} : vector<128x128xbf16>, vector<128x128xbf16>, vector<128x128xf32> -> vector<128x128xf32>
    %c0_3 = arith.constant 0 : index
    %c0_4 = arith.constant 0 : index
    %3 = vector.load %arg3[%c0_3, %c0_4] : memref<128x128xf32, #tpu.memory_space<vmem>>, vector<128x128xf32>
    tpu.vector_store %arg3[%c0_3, %c0_4], %2 {strides = array<i32>} : memref<128x128xf32, #tpu.memory_space<vmem>>, vector<128x128xf32>,
    return
  }
  func.func @transform_0(%arg0: i32) -> (i32, i32) {
    %c0_i32 = arith.constant 0 : i32
    %c0_i32_0 = arith.constant 0 : i32
    %c0_i32_1 = arith.constant 0 : i32
    return %c0_i32, %c0_i32_0 : i32, i32
  }
  func.func @transform_1(%arg0: i32) -> (i32, i32) {
    %c0_i32 = arith.constant 0 : i32
    %c0_i32_0 = arith.constant 0 : i32
    %c0_i32_1 = arith.constant 0 : i32
    return %c0_i32, %c0_i32_0 : i32, i32
  }
  func.func @transform_2(%arg0: i32) -> (i32, i32) {
    %c0_i32 = arith.constant 0 : i32
    %c0_i32_0 = arith.constant 0 : i32
    %c0_i32_1 = arith.constant 0 : i32
    return %c0_i32, %c0_i32_0 : i32, i32
  }
}

</mosaic_0001>

<bundles_post_ra>
// kernel: tpu_custom_call.1
= control target key start
LH: loop header
LB: loop body
LE: loop exit
PB: predicated region body
PF: predicated region fallthrough
CT: control target
= control target key end

     0   :  { %7 = vsyncpa [#allocation3], 0  ;;  %s533_s0 = inlined_call_operand.hbm [shape: bf16[128,128], index: 0, kind: input, shape index: {}]   ;;  %s534_s1 = inlined_call_operand.hbm [shape: bf16[128,128], index: 1, kind: input, shape index: {}]   ;;  %s535_s2 = inlined_call_operand.hbm [shape: f32[128,128], index: 2, kind: output, shape index: {}]  }
   0x1   :  { %8 = vsyncpa [#allocation6], 0 }
   0x2   :  { %9 = vsyncpa [#allocation4], 0  ;;  %s475_s9 = smov [#allocation2]   ;;  %s403_s13 = scalar_lea.hbm %s533_s0, 1024 }
   0x3   :  { %s15_s10 = sshll.u32 %s475_s9, 4  ;;  %p404_p0 = scmp.ne.s32.totalorder %s533_s0, %s403_s13  ;;  %s16_s10 = int_to_ptr.vmem [resolvable:$true] %s15_s10 }
   0x4   :  { %p407_p1 = scmp.lt.u32.totalorder %s403_s13, %s533_s0 }
   0x6   :  { %p409_p2 = pnand %p407_p1, %p404_p0 }
   0x8   :  { %412 = shalt.err (!%p409_p2)
}
   0x9   :  { %s413_s18 = scalar_lea.vmem %s16_s10, 1024  ;;  %p418_p4 = scmp.lt.s32.totalorder %s16_s10, %s16_s10 }
   0xa   :  { %p414_p3 = scmp.ne.s32.totalorder %s16_s10, %s413_s18  ;;  %p419_p5 = scmp.lt.s32.totalorder %s413_s18, %s413_s18 }
   0xc   :  { %p420_p6 = por %p419_p5, %p418_p4 }
   0xe   :  { %p421_p7 = pnand %p420_p6, %p414_p3 }
  0x10   :  { %424 = shalt.err (!%p421_p7)
}
  0x11   :  { %s476_s19 = smov 64   ;;  %s477_s20 = smov 4  }
  0x12   :  { %21 = dma.hbm_to_vmem [thread:$0]  %s533_s0, 1024, %s16_s10, [#allocation3], %s476_s19, %s476_s19, %s477_s20  }
  0x13   :  { %s478_s23 = smov [#allocation5]   ;;  %s425_s27 = scalar_lea.hbm %s534_s1, 1024 }
  0x14   :  { %s27_s24 = sshll.u32 %s478_s23, 4  ;;  %p426_p8 = scmp.ne.s32.totalorder %s534_s1, %s425_s27  ;;  %s28_s24 = int_to_ptr.vmem [resolvable:$true] %s27_s24 }
  0x15   :  { %p429_p9 = scmp.lt.u32.totalorder %s425_s27, %s534_s1 }
  0x17   :  { %p431_p10 = pnand %p429_p9, %p426_p8 }
  0x19   :  { %434 = shalt.err (!%p431_p10)
}
  0x1a   :  { %s435_s4 = scalar_lea.vmem %s28_s24, 1024  ;;  %p440_p12 = scmp.lt.s32.totalorder %s28_s24, %s28_s24 }
  0x1b   :  { %p436_p11 = scmp.ne.s32.totalorder %s28_s24, %s435_s4  ;;  %p441_p13 = scmp.lt.s32.totalorder %s435_s4, %s435_s4 }
  0x1d   :  { %p442_p0 = por %p441_p13, %p440_p12 }
  0x1f   :  { %p443_p1 = pnand %p442_p0, %p436_p11 }
  0x21   :  { %446 = shalt.err (!%p443_p1)
}
  0x22   :  { %33 = dma.hbm_to_vmem [thread:$0]  %s534_s1, 1024, %s28_s24, [#allocation6], %s476_s19, %s476_s19, %s477_s20  }
  0x23   :  { %469 = dma.done.wait [#allocation3], 1024  }
  0x24   :  { %470 = vsyncadd [#allocation3], 4294966272 }
  0x25   :  { %471 = dma.done.wait [#allocation6], 1024  }
  0x26   :  { %472 = vsyncadd [#allocation6], 4294966272  ;;  %v387_v0 = vld [vmem:[#allocation5] sm:$0xff]   ;;  %v388_v1 = vld [vmem:[#allocation5 + $0x8] sm:$0xff]   ;;  %s479_s1 = smov [#allocation7]  }
  0x27   :  { %332 = vmatprep.subr.bf16.mxu0 %v387_v0  ;;  %364 = vmatprep.subr.bf16.mxu1 %v387_v0  ;;  %v389_v2 = vld [vmem:[#allocation5 + $0x10] sm:$0xff]   ;;  %v390_v3 = vld [vmem:[#allocation5 + $0x18] sm:$0xff]   ;;  %v395_v4 = vld [vmem:[#allocation2] sm:$0xff]   ;;  %s287_s6 = sshll.u32 %s479_s1, 4  ;;  %s288_s6 = int_to_ptr.vmem [resolvable:$true] %s287_s6 }
  0x28   :  { %333 = vmatpush3.bf16.msra.mxu0 %v387_v0  ;;  %372 = vmatpush3.bf16.msra.mxu1 %v387_v0  ;;  %v396_v5 = vld [vmem:[#allocation2 + $0x20] sm:$0xff]   ;;  %v392_v7 = vld [vmem:[#allocation5 + $0x28] sm:$0xff]   ;;  %v393_v8 = vld [vmem:[#allocation5 + $0x30] sm:$0xff]   ;;  %s447_s7 = scalar_lea.vmem %s288_s6, 2048  ;;  %p452_p3 = scmp.lt.s32.totalorder %s288_s6, %s288_s6 }
  0x29   :  { %334 = vmatprep.subr.bf16.mxu0 %v388_v1  ;;  %365 = vmatprep.subr.bf16.mxu1 %v388_v1  ;;  %v391_v6 = vld [vmem:[#allocation5 + $0x20] sm:$0xff]   ;;  %v394_v9 = vld [vmem:[#allocation5 + $0x38] sm:$0xff]   ;;  %v397_v10 = vld [vmem:[#allocation2 + $0x8] sm:$0xff]   ;;  %p448_p2 = scmp.ne.s32.totalorder %s288_s6, %s447_s7  ;;  %p453_p4 = scmp.lt.s32.totalorder %s447_s7, %s447_s7 }
  0x2a   :  { %348 = vmatprep.mubr.bf16.mxu0 %v395_v4  ;;  %356 = vmatprep.mubr.bf16.mxu1 %v396_v5  ;;  %v398_v11 = vld [vmem:[#allocation2 + $0x28] sm:$0xff]   ;;  %v399_v12 = vld [vmem:[#allocation2 + $0x10] sm:$0xff]   ;;  %v401_v14 = vld [vmem:[#allocation2 + $0x18] sm:$0xff]  }
  0x2b   :  { %v400_v13 = vld [vmem:[#allocation2 + $0x30] sm:$0xff]   ;;  %v402_v15 = vld [vmem:[#allocation2 + $0x38] sm:$0xff]   ;;  %p454_p5 = por %p453_p4, %p452_p3 }
  0x2c   :  { %335 = vmatpush3.bf16.msra.mxu0 %v388_v1  ;;  %373 = vmatpush3.bf16.msra.mxu1 %v388_v1 }
  0x2d   :  { %336 = vmatprep.subr.bf16.mxu0 %v389_v2  ;;  %366 = vmatprep.subr.bf16.mxu1 %v389_v2  ;;  %p455_p6 = pnand %p454_p5, %p448_p2 }
  0x30   :  { %337 = vmatpush3.bf16.msra.mxu0 %v389_v2  ;;  %374 = vmatpush3.bf16.msra.mxu1 %v389_v2 }
  0x31   :  { %338 = vmatprep.subr.bf16.mxu0 %v390_v3  ;;  %367 = vmatprep.subr.bf16.mxu1 %v390_v3 }
  0x34   :  { %339 = vmatpush3.bf16.msra.mxu0 %v390_v3  ;;  %375 = vmatpush3.bf16.msra.mxu1 %v390_v3 }
  0x35   :  { %340 = vmatprep.subr.bf16.mxu0 %v391_v6  ;;  %368 = vmatprep.subr.bf16.mxu1 %v391_v6 }
  0x38   :  { %341 = vmatpush3.bf16.msra.mxu0 %v391_v6  ;;  %376 = vmatpush3.bf16.msra.mxu1 %v391_v6 }
  0x39   :  { %342 = vmatprep.subr.bf16.mxu0 %v392_v7  ;;  %369 = vmatprep.subr.bf16.mxu1 %v392_v7 }
  0x3c   :  { %343 = vmatpush3.bf16.msra.mxu0 %v392_v7  ;;  %377 = vmatpush3.bf16.msra.mxu1 %v392_v7 }
  0x3d   :  { %344 = vmatprep.subr.bf16.mxu0 %v393_v8  ;;  %370 = vmatprep.subr.bf16.mxu1 %v393_v8 }
  0x40   :  { %345 = vmatpush3.bf16.msra.mxu0 %v393_v8  ;;  %378 = vmatpush3.bf16.msra.mxu1 %v393_v8 }
  0x41   :  { %346 = vmatprep.subr.bf16.mxu0 %v394_v9  ;;  %371 = vmatprep.subr.bf16.mxu1 %v394_v9 }
  0x44   :  { %347 = vmatpush3.bf16.msra.mxu0 %v394_v9  ;;  %379 = vmatpush3.bf16.msra.mxu1 %v394_v9 }
  0x47   :  { %349 = vmatmul.mubr.bf16.vlgmr.msra.gmra.mrb[0].mxu0 %v397_v10  ;;  %357 = vmatmul.mubr.bf16.vlgmr.msra.gmra.mrb[0].mxu1 %v398_v11 }
  0x48   :  { %352 = vmatprep.mubr.bf16.mxu0 %v399_v12  ;;  %360 = vmatprep.mubr.bf16.mxu1 %v400_v13 }
  0x4f   :  { %353 = vmatmul.mubr.bf16.gmra.mrb[4].mxu0 %v401_v14  ;;  %361 = vmatmul.mubr.bf16.gmra.mrb[4].mxu1 %v402_v15 }
 0x11a   :  { %v350_v16 = vpop.f32.mrb[0].mxu0  ;;  %v358_v17 = vpop.f32.mrb[0].mxu1 }
 0x11b   :  { %268 = vst [vmem:[#allocation7 + $0x10] sm:$0xff] %v350_v16  ;;  %276 = vst [vmem:[#allocation7 + $0x50] sm:$0xff] %v358_v17  ;;  %v203_v18 = vpop.f32.mrb[1].mxu0  ;;  %v235_v19 = vpop.f32.mrb[1].mxu1 }
 0x11c   :  { %266 = vst [vmem:[#allocation7] sm:$0xff] %v203_v18  ;;  %274 = vst [vmem:[#allocation7 + $0x40] sm:$0xff] %v235_v19  ;;  %v351_v20 = vpop.f32.mrb[2].mxu0  ;;  %v359_v21 = vpop.f32.mrb[2].mxu1 }
 0x11d   :  { %269 = vst [vmem:[#allocation7 + $0x18] sm:$0xff] %v351_v20  ;;  %277 = vst [vmem:[#allocation7 + $0x58] sm:$0xff] %v359_v21  ;;  %v206_v22 = vpop.f32.mrb[3].mxu0  ;;  %v238_v23 = vpop.f32.mrb[3].mxu1 }
 0x11e   :  { %267 = vst [vmem:[#allocation7 + $0x8] sm:$0xff] %v206_v22  ;;  %275 = vst [vmem:[#allocation7 + $0x48] sm:$0xff] %v238_v23 }
 0x122   :  { %v354_v24 = vpop.f32.mrb[4].mxu0  ;;  %v362_v25 = vpop.f32.mrb[4].mxu1 }
 0x123   :  { %272 = vst [vmem:[#allocation7 + $0x30] sm:$0xff] %v354_v24  ;;  %280 = vst [vmem:[#allocation7 + $0x70] sm:$0xff] %v362_v25  ;;  %v219_v26 = vpop.f32.mrb[5].mxu0  ;;  %v251_v27 = vpop.f32.mrb[5].mxu1 }
 0x124   :  { %270 = vst [vmem:[#allocation7 + $0x20] sm:$0xff] %v219_v26  ;;  %278 = vst [vmem:[#allocation7 + $0x60] sm:$0xff] %v251_v27  ;;  %v355_v28 = vpop.f32.mrb[6].mxu0  ;;  %v363_v29 = vpop.f32.mrb[6].mxu1 }
 0x125   :  { %273 = vst [vmem:[#allocation7 + $0x38] sm:$0xff] %v355_v28  ;;  %281 = vst [vmem:[#allocation7 + $0x78] sm:$0xff] %v363_v29  ;;  %v222_v30 = vpop.f32.mrb[7].mxu0  ;;  %v254_v31 = vpop.f32.mrb[7].mxu1 }
 0x126   :  { %271 = vst [vmem:[#allocation7 + $0x28] sm:$0xff] %v222_v30  ;;  %279 = vst [vmem:[#allocation7 + $0x68] sm:$0xff] %v254_v31 }
 0x127   :  { %458 = shalt.err (!%p455_p6)
}
 0x128   :  { %s459_s10 = scalar_lea.hbm %s535_s2, 2048 }
 0x129   :  { %p460_p7 = scmp.ne.s32.totalorder %s535_s2, %s459_s10  ;;  %p463_p8 = scmp.lt.u32.totalorder %s459_s10, %s535_s2 }
 0x12b   :  { %p465_p9 = pnand %p463_p8, %p460_p7 }
 0x12d   :  { %468 = shalt.err (!%p465_p9)
}
 0x12e   :  { %s480_s15 = smov 128   ;;  %s481_s16 = smov 8  }
 0x12f   :  { %293 = dma.vmem_to_hbm [thread:$0]  %s288_s6, 2048, %s535_s2, [#allocation4], %s480_s15, %s480_s15, %s481_s16  }
 0x130   :  { %473 = dma.done.wait [#allocation4], 2048  }
 0x131   :  { %474 = vsyncadd [#allocation4], 4294965248 }
 0x132   :  { %297 = vsyncpa [#allocation3], 1 }
 0x133   :  { %298 = vsyncpa [#allocation6], 1 }
 0x134   :  { %299 = vsyncpa [#allocation4], 1 }

</bundles_post_ra>
